<compile_context>
chip_gen: v7x
topology: tpu7x:2x2x1
jax: 0.10.0
libtpu: 0.0.40
codegen_flags: <defaults>
</compile_context>

<pallas_src>
import functools

import jax
import jax.numpy as jnp
from jax.experimental import pallas as pl
from jax.experimental.pallas import tpu as pltpu


def _mean_sub_kernel(x_ref, o_ref, *, hw, k):
    x = x_ref[...]
    inv_hw = 1.0 / hw
    if k == 1:
        # Row sum accumulated in f32; widening is fused into the reduction so
        # no full f32 copy of the tile is materialized (matters for bf16).
        s = jnp.sum(x, axis=-1, keepdims=True, dtype=jnp.float32)      # (TM, 1)
        mean = (s * inv_hw).astype(x.dtype)
        o_ref[...] = x - mean
    else:
        # Lane-packed small-HW path: each row holds k independent (n, c) maps
        # of hw pixels.  Per-segment sums and the mean broadcast are done with
        # one-hot matmuls on the (idle) MXU instead of cross-lane relayouts.
        tl = k * hw
        j = jax.lax.broadcasted_iota(jnp.int32, (tl, k), 0)
        s_id = jax.lax.broadcasted_iota(jnp.int32, (tl, k), 1)
        m = ((j >= s_id * hw) & (j < (s_id + 1) * hw)).astype(x.dtype)   # (tl, k)
        jt = jax.lax.broadcasted_iota(jnp.int32, (k, tl), 1)
        st = jax.lax.broadcasted_iota(jnp.int32, (k, tl), 0)
        mt = ((jt >= st * hw) & (jt < (st + 1) * hw)).astype(x.dtype)    # (k, tl)

        sums = jnp.dot(x, m, preferred_element_type=jnp.float32,
                       precision=jax.lax.Precision.HIGHEST)              # (TM, k)
        means = (sums * inv_hw).astype(x.dtype)
        mean_full = jnp.dot(means, mt, preferred_element_type=jnp.float32,
                            precision=jax.lax.Precision.HIGHEST).astype(x.dtype)
        o_ref[...] = x - mean_full


def _choose_pack(nc, hw):
    """Pack k (n, c) maps per row when HW < 128 so stores are lane-dense."""
    if hw >= 128:
        return 1
    best = 1
    for k in range(2, nc + 1):
        if nc % k:
            continue
        if k * hw > 4096:
            break
        best = k
        if k * hw >= 512:
            break
    return best


def _tpu_vmem_capacity_bytes():
    try:
        info = pltpu.get_tpu_info()
        cap = getattr(info, "vmem_capacity_bytes", None)
        if cap:
            return int(cap)
    except Exception:
        pass
    return 64 << 20  # conservative fallback (v7x per-TensorCore VMEM)


def _choose_tm(num_rows, row_bytes, sublane, target_block_bytes):
    """Rows per block: ~target-sized, sublane-aligned, even >=2-step grid."""
    if num_rows <= sublane:
        return num_rows                          # full extent is always legal
    tm = (target_block_bytes // max(1, row_bytes)) // sublane * sublane
    tm = max(sublane, tm)
    tm = min(tm, num_rows)
    if num_rows >= 2 * sublane:
        steps = -(-num_rows // tm)               # ceil div
        if steps < 2:
            steps = 2                            # give v7x's 2 TCs work
        elif steps % 2:
            steps += 1                           # balanced split across TCs
        rows_per_step = -(-num_rows // steps)
        tm = -(-rows_per_step // sublane) * sublane
        tm = max(sublane, min(tm, num_rows))
    return tm


def my_bn_2(x):
    """x: (N, C, H, W). Returns x - mean_{H,W}(x), same shape/dtype (My_Bn_2)."""
    N, C, H, W = x.shape
    NC, HW = N * C, H * W
    k = _choose_pack(NC, HW)
    R, L = NC // k, k * HW
    x2 = x.reshape(R, L)

    dtype_bytes = jnp.dtype(x.dtype).itemsize
    sublane = max(8, 8 * (4 // dtype_bytes))     # 8 f32 / 16 bf16 / 32 int8

    vmem_cap = _tpu_vmem_capacity_bytes()
    if vmem_cap <= (64 << 20):                   # v7x-class: 64 MiB VMEM / TC
        target_block_bytes = 6 << 20
        vmem_ceiling = 48 << 20
    else:                                        # v5e / v6e: 128 MiB VMEM
        target_block_bytes = 8 << 20
        vmem_ceiling = 96 << 20

    row_bytes = L * dtype_bytes
    TM = _choose_tm(R, row_bytes, sublane, target_block_bytes)
    block_bytes = TM * row_bytes
    # Double-buffered in + out ~= 4x block bytes, plus headroom.
    # TODO(synk): for extreme spatial maps (single row >> target block) also
    # tile the HW axis with a two-pass sum instead of clamping to the ceiling.
    vmem_limit = int(min(vmem_ceiling, max(32 << 20, 4 * block_bytes + (2 << 20))))

    grid = (pl.cdiv(R, TM),)
    kernel = functools.partial(_mean_sub_kernel, hw=HW, k=k)

    out2 = pl.pallas_call(
        kernel,
        out_shape=jax.ShapeDtypeStruct((R, L), x.dtype),
        grid=grid,
        in_specs=[pl.BlockSpec((TM, L), lambda i: (i, 0))],
        out_specs=pl.BlockSpec((TM, L), lambda i: (i, 0)),
        compiler_params=pltpu.CompilerParams(
            dimension_semantics=("parallel",),
            vmem_limit_bytes=vmem_limit,
        ),
        cost_estimate=pl.CostEstimate(
            flops=2 * R * L * (1 + (2 * k if k > 1 else 0)),
            transcendentals=0,
            bytes_accessed=2 * R * L * dtype_bytes,
        ),
    )(x2)

    return out2.reshape(N, C, H, W)


def _reference(x):
    return x - jnp.mean(x.astype(jnp.float32), axis=(2, 3), keepdims=True).astype(x.dtype)


if __name__ == "__main__":
    key = jax.random.PRNGKey(0)

    # Primary test: small shape from the module spec (single block, HW=256).
    x = jax.random.normal(key, (2, 4, 16, 16), dtype=jnp.float32)
    y = my_bn_2(x)
    jax.block_until_ready(y)
    assert y.shape == x.shape
    assert jnp.allclose(y, _reference(x), atol=1e-5, rtol=1e-5), "f32 mismatch"

    # Multi-block test: row tiling, ragged last block, even 2-step parallel grid.
    x2 = jax.random.normal(jax.random.PRNGKey(1), (4, 30, 16, 16), dtype=jnp.float32)
    y2 = my_bn_2(x2)
    jax.block_until_ready(y2)
    assert jnp.allclose(y2, _reference(x2), atol=1e-5, rtol=1e-5), "tiled f32 mismatch"

    # bf16 test: sublane=16 rounding, f32-accumulated mean, bf16 subtract/store.
    x3 = jax.random.normal(jax.random.PRNGKey(2), (2, 4, 16, 16), dtype=jnp.bfloat16)
    y3 = my_bn_2(x3)
    jax.block_until_ready(y3)
    assert jnp.allclose(y3.astype(jnp.float32), _reference(x3).astype(jnp.float32),
                        atol=5e-2, rtol=5e-2), "bf16 mismatch"

    # Small-HW (7x7) lane-packed path, f32, multi-block.
    x4 = jax.random.normal(jax.random.PRNGKey(3), (4, 128, 7, 7), dtype=jnp.float32)
    y4 = my_bn_2(x4)
    jax.block_until_ready(y4)
    assert jnp.allclose(y4, _reference(x4), atol=1e-3, rtol=1e-3), "packed f32 mismatch"

    # Small-HW lane-packed path, bf16, single full-extent block.
    x5 = jax.random.normal(jax.random.PRNGKey(4), (2, 64, 7, 7), dtype=jnp.bfloat16)
    y5 = my_bn_2(x5)
    jax.block_until_ready(y5)
    assert jnp.allclose(y5.astype(jnp.float32), _reference(x5).astype(jnp.float32),
                        atol=5e-2, rtol=5e-2), "packed bf16 mismatch"

    print("KERNEL_OK")
</pallas_src>

<mosaic_0001>
module attributes {stable_mosaic.version = 11 : i64} {
  func.func @_mean_sub_kernel(%arg0: i32, %arg1: memref<8x256xf32, #tpu.memory_space<vmem>>, %arg2: memref<8x256xf32, #tpu.memory_space<vmem>>) attributes {dimension_semantics = [#tpu.dimension_semantics<parallel>], iteration_bounds = array<i64: 1>, scalar_prefetch = 0 : i64, scratch_operands = 0 : i64, tpu.core_type = #tpu.core_type<tc>, window_params = [{transform_indices = @transform_0, window_bounds = array<i64: 8, 256>}, {transform_indices = @transform_1, window_bounds = array<i64: 8, 256>}]} {
    %c0 = arith.constant 0 : index
    %c0_0 = arith.constant 0 : index
    %0 = vector.load %arg1[%c0, %c0_0] : memref<8x256xf32, #tpu.memory_space<vmem>>, vector<8x256xf32>
    %cst = arith.constant dense<0.000000e+00> : vector<8xf32>
    %1 = vector.multi_reduction <add>, %0, %cst [1] : vector<8x256xf32> to vector<8xf32>
    %2 = vector.shape_cast %1 : vector<8xf32> to vector<8x1xf32>
    %cst_1 = arith.constant 3.906250e-03 : f32
    %3 = vector.broadcast %cst_1 : f32 to vector<8x1xf32>
    %4 = arith.mulf %2, %3 : vector<8x1xf32>
    %5 = vector.broadcast %4 : vector<8x1xf32> to vector<8x256xf32>
    %6 = arith.subf %0, %5 : vector<8x256xf32>
    %c0_2 = arith.constant 0 : index
    %c0_3 = arith.constant 0 : index
    %7 = vector.load %arg2[%c0_2, %c0_3] : memref<8x256xf32, #tpu.memory_space<vmem>>, vector<8x256xf32>
    tpu.vector_store %arg2[%c0_2, %c0_3], %6 {strides = array<i32>} : memref<8x256xf32, #tpu.memory_space<vmem>>, vector<8x256xf32>,
    return
  }
  func.func @transform_0(%arg0: i32) -> (i32, i32) {
    %c0_i32 = arith.constant 0 : i32
    %c0_i32_0 = arith.constant 0 : i32
    return %arg0, %c0_i32 : i32, i32
  }
  func.func @transform_1(%arg0: i32) -> (i32, i32) {
    %c0_i32 = arith.constant 0 : i32
    %c0_i32_0 = arith.constant 0 : i32
    return %arg0, %c0_i32 : i32, i32
  }
}

</mosaic_0001>

<bundles_post_ra>
// kernel: tpu_custom_call.1
= control target key start
LH: loop header
LB: loop body
LE: loop exit
PB: predicated region body
PF: predicated region fallthrough
CT: control target
= control target key end

     0   :  { %6 = vsyncpa [#allocation3], 0  ;;  %s132_s0 = inlined_call_operand.hbm [shape: f32[8,256], index: 0, kind: input, shape index: {}]   ;;  %s133_s1 = inlined_call_operand.hbm [shape: f32[8,256], index: 1, kind: output, shape index: {}]  }
   0x1   :  { %7 = vsyncpa [#allocation4], 0  ;;  %s96_s6 = smov [#allocation2]   ;;  %s48_s10 = scalar_lea.hbm %s132_s0, 256 }
   0x2   :  { %s14_s7 = sshll.u32 %s96_s6, 4  ;;  %p49_p0 = scmp.ne.s32.totalorder %s132_s0, %s48_s10  ;;  %s15_s7 = int_to_ptr.vmem [resolvable:$true] %s14_s7 }
   0x3   :  { %p52_p1 = scmp.lt.u32.totalorder %s48_s10, %s132_s0 }
   0x5   :  { %p54_p2 = pnand %p52_p1, %p49_p0 }
   0x7   :  { %57 = shalt.err (!%p54_p2)
}
   0x8   :  { %s58_s15 = scalar_lea.vmem %s15_s7, 256  ;;  %p63_p4 = scmp.lt.s32.totalorder %s15_s7, %s15_s7 }
   0x9   :  { %p59_p3 = scmp.ne.s32.totalorder %s15_s7, %s58_s15  ;;  %p64_p5 = scmp.lt.s32.totalorder %s58_s15, %s58_s15 }
   0xb   :  { %p65_p6 = por %p64_p5, %p63_p4 }
   0xd   :  { %p66_p7 = pnand %p65_p6, %p59_p3 }
   0xf   :  { %69 = shalt.err (!%p66_p7)
}
  0x10   :  { %17 = dma.hbm_to_vmem [thread:$0]  %s132_s0, 256, %s15_s7, [#allocation3]  }
  0x11   :  { %92 = dma.done.wait [#allocation3], 256  }
  0x12   :  { %93 = vsyncadd [#allocation3], 4294967040  ;;  %v21_v0 = vld [vmem:[#allocation2] sm:$0xff]  ;;  %v22_v1 = vld [vmem:[#allocation2 + $0x8] sm:$0xff]  ;;  %s97_s18 = smov [#allocation5]  }
  0x13   :  { %v23_v2 = vadd.f32 %v22_v1, %v21_v0  ;;  %s37_s19 = sshll.u32 %s97_s18, 4  ;;  %s38_s19 = int_to_ptr.vmem [resolvable:$true] %s37_s19 }
  0x14   :  { %s70_s20 = scalar_lea.vmem %s38_s19, 256  ;;  %p75_p9 = scmp.lt.s32.totalorder %s38_s19, %s38_s19 }
  0x15   :  { %24 = vadd.xlane.f32.xlu0 %v23_v2  ;;  %p71_p8 = scmp.ne.s32.totalorder %s38_s19, %s70_s20  ;;  %p76_p10 = scmp.lt.s32.totalorder %s70_s20, %s70_s20 }
  0x17   :  { %p77_p11 = por %p76_p10, %p75_p9 }
  0x19   :  { %p78_p12 = pnand %p77_p11, %p71_p8 }
  0xa2   :  { %v25_v3 = vpop.xlane.xlu0 %24 }
  0xa3   :  { %v26_v4 = vmul.f32 0.00390625, %v25_v3 }
  0xa5   :  { %v27_v5 = vsub.f32 %v21_v0, %v26_v4  ;;  %v28_v6 = vsub.f32 %v22_v1, %v26_v4 }
  0xa7   :  { %29 = vst [vmem:[#allocation5] sm:$0xff] %v27_v5  ;;  %30 = vst [vmem:[#allocation5 + $0x8] sm:$0xff] %v28_v6 }
  0xa8   :  { %81 = shalt.err (!%p78_p12)
}
  0xa9   :  { %s82_s22 = scalar_lea.hbm %s133_s1, 256 }
  0xaa   :  { %p83_p13 = scmp.ne.s32.totalorder %s133_s1, %s82_s22  ;;  %p86_p0 = scmp.lt.u32.totalorder %s82_s22, %s133_s1 }
  0xac   :  { %p88_p1 = pnand %p86_p0, %p83_p13 }
  0xae   :  { %91 = shalt.err (!%p88_p1)
}
  0xaf   :  { %40 = dma.vmem_to_hbm [thread:$0]  %s38_s19, 256, %s133_s1, [#allocation4]  }
  0xb0   :  { %94 = dma.done.wait [#allocation4], 256  }
  0xb1   :  { %95 = vsyncadd [#allocation4], 4294967040 }
  0xb2   :  { %44 = vsyncpa [#allocation3], 1 }
  0xb3   :  { %45 = vsyncpa [#allocation4], 1 }

</bundles_post_ra>
